<compile_context>
chip_gen: v7x
topology: tpu7x:2x2x1
jax: 0.10.0
libtpu: 0.0.40
codegen_flags: <defaults>
</compile_context>

<pallas_src>
import jax
import jax.numpy as jnp
from jax.experimental import pallas as pl
from jax.experimental.pallas import tpu as pltpu

INPUT_SIZE = 36
HIDDEN_SIZE = 18
OUTPUT_SIZE = 1


def _round_up(n, m):
    return ((n + m - 1) // m) * m


def _choose_tile(batch, requested_rows):
    """Batch tile (sublane dim): multiple of 8, <= batch (rounded up), and
    capped so large batches give >= 2 grid steps (feeds both v7x TCs)."""
    b_al = _round_up(batch, 8)
    tile = min(_round_up(requested_rows, 8), b_al)
    if b_al >= 2048:  # big enough that splitting across 2 cores is worth it
        tile = min(tile, _round_up(pl.cdiv(b_al, 2), 8))
    return max(tile, 8)


def fnn_kernel(x_ref, w1_ref, b1_ref, w2_ref, b2_ref, w3_ref, sc_ref, o_ref):
    # Row-major: x_ref is (TB, 36), batch on sublanes, features on lanes.
    x = x_ref[...]                                   # (TB, 36)
    a1 = sc_ref[0]                                   # PReLU slope 1 (SMEM)
    a2 = sc_ref[1]                                   # PReLU slope 2 (SMEM)
    b3 = sc_ref[2]                                   # output bias   (SMEM)

    # Layer 1: Linear + PReLU   (TB,36)@(36,18) -> (TB,18)
    h1 = jnp.dot(x, w1_ref[...], preferred_element_type=jnp.float32) + b1_ref[...]
    h1 = jnp.where(h1 >= 0, h1, a1 * h1)
    # Dropout(p=0.1) -> identity in eval mode.

    # Layer 2: Linear + PReLU   (TB,18)@(18,18) -> (TB,18)
    h2 = jnp.dot(h1, w2_ref[...], preferred_element_type=jnp.float32) + b2_ref[...]
    h2 = jnp.where(h2 >= 0, h2, a2 * h2)
    # Dropout(p=0.1) -> identity in eval mode.

    # Layer 3: Linear (output)  (TB,18)@(18,1) -> (TB,1)
    o_ref[...] = jnp.dot(h2, w3_ref[...], preferred_element_type=jnp.float32) + b3


def fnn_forward(x, w1, b1, a1, w2, b2, a2, w3, b3, *, tile_rows=16384):
    """x: (B, 36) f32, row-major (consumed as-is, no transpose/pad).
    Weights in PyTorch layout: w (out, in), b (out,). a1/a2: scalar PReLU
    slopes. Returns (B, 1) f32."""
    x = jnp.asarray(x, jnp.float32)
    B = x.shape[0]

    tile = _choose_tile(B, tile_rows)
    grid = (pl.cdiv(B, tile),)        # ragged last block handled by the grid

    # Tiny one-time layout plumbing: (in, out) weight layout, row biases,
    # scalars packed for SMEM.
    w1t = jnp.asarray(w1, jnp.float32).T               # (36, 18)
    w2t = jnp.asarray(w2, jnp.float32).T               # (18, 18)
    w3t = jnp.asarray(w3, jnp.float32).T               # (18, 1)
    b1r = jnp.asarray(b1, jnp.float32).reshape(1, HIDDEN_SIZE)
    b2r = jnp.asarray(b2, jnp.float32).reshape(1, HIDDEN_SIZE)
    scalars = jnp.stack([
        jnp.asarray(a1, jnp.float32).reshape(()),
        jnp.asarray(a2, jnp.float32).reshape(()),
        jnp.asarray(b3, jnp.float32).reshape(()),
    ])                                                  # (3,) f32 -> SMEM

    const = lambda i: (0, 0)          # weights / biases resident every step

    # True HBM traffic / flops (no padded copies counted).
    flops = 2 * B * (INPUT_SIZE * HIDDEN_SIZE
                     + HIDDEN_SIZE * HIDDEN_SIZE
                     + HIDDEN_SIZE * OUTPUT_SIZE)
    bytes_accessed = 4 * (B * INPUT_SIZE + B * OUTPUT_SIZE
                          + w1t.size + w2t.size + w3t.size
                          + 2 * HIDDEN_SIZE + 3)

    out = pl.pallas_call(
        fnn_kernel,
        out_shape=jax.ShapeDtypeStruct((B, OUTPUT_SIZE), jnp.float32),
        grid_spec=pltpu.PrefetchScalarGridSpec(
            num_scalar_prefetch=0,
            grid=grid,
            in_specs=[
                pl.BlockSpec((tile, INPUT_SIZE), lambda i: (i, 0)),        # x (TB,36)
                pl.BlockSpec((INPUT_SIZE, HIDDEN_SIZE), const),            # w1.T (36,18)
                pl.BlockSpec((1, HIDDEN_SIZE), const),                     # b1 (1,18)
                pl.BlockSpec((HIDDEN_SIZE, HIDDEN_SIZE), const),           # w2.T (18,18)
                pl.BlockSpec((1, HIDDEN_SIZE), const),                     # b2 (1,18)
                pl.BlockSpec((HIDDEN_SIZE, OUTPUT_SIZE), const),           # w3.T (18,1)
                pl.BlockSpec(memory_space=pltpu.MemorySpace.SMEM),         # [a1,a2,b3]
            ],
            out_specs=pl.BlockSpec((tile, OUTPUT_SIZE), lambda i: (i, 0)), # (TB,1)
        ),
        compiler_params=pltpu.CompilerParams(
            dimension_semantics=("parallel",)),
        cost_estimate=pl.CostEstimate(flops=flops, transcendentals=0,
                                      bytes_accessed=bytes_accessed),
    )(x, w1t, b1r, w2t, b2r, w3t, scalars)

    return out                                           # (B, 1), no post-transpose


def init_params(key):
    """Deterministic init mirroring PyTorch defaults (uniform +-1/sqrt(fan_in),
    PReLU a = 0.25). Weights in PyTorch (out_features, in_features) layout."""
    ks = jax.random.split(key, 6)

    def linear(kw, kb, fan_in, fan_out):
        bound = 1.0 / jnp.sqrt(jnp.float32(fan_in))
        w = jax.random.uniform(kw, (fan_out, fan_in), jnp.float32, -bound, bound)
        b = jax.random.uniform(kb, (fan_out,), jnp.float32, -bound, bound)
        return w, b

    w1, b1 = linear(ks[0], ks[1], INPUT_SIZE, HIDDEN_SIZE)
    w2, b2 = linear(ks[2], ks[3], HIDDEN_SIZE, HIDDEN_SIZE)
    w3, b3 = linear(ks[4], ks[5], HIDDEN_SIZE, OUTPUT_SIZE)
    a1 = jnp.float32(0.25)
    a2 = jnp.float32(0.25)
    return w1, b1, a1, w2, b2, a2, w3, b3


def fnn_reference(x, w1, b1, a1, w2, b2, a2, w3, b3):
    prelu = lambda v, a: jnp.where(v >= 0, v, a * v)
    h1 = prelu(x @ w1.T + b1, a1)
    h2 = prelu(h1 @ w2.T + b2, a2)
    return h2 @ w3.T + b3


if __name__ == "__main__":
    key = jax.random.PRNGKey(0)
    k_x, k_p = jax.random.split(key)
    params = init_params(k_p)

    # Small batch: single (8, 36) block.
    B = 8
    x = jax.random.normal(k_x, (B, INPUT_SIZE), jnp.float32)
    out = jax.block_until_ready(fnn_forward(x, *params))
    ref = fnn_reference(x, *params)
    assert out.shape == (B, OUTPUT_SIZE)
    assert jnp.allclose(out, ref, atol=1e-4, rtol=1e-4), "mismatch vs reference (small)"

    # Non-multiple batch, default tile: 2 grid steps, ragged last block.
    B2 = 4133
    x2 = jax.random.normal(k_x, (B2, INPUT_SIZE), jnp.float32)
    out2 = jax.block_until_ready(fnn_forward(x2, *params))
    ref2 = fnn_reference(x2, *params)
    assert out2.shape == (B2, OUTPUT_SIZE)
    assert jnp.allclose(out2, ref2, atol=1e-4, rtol=1e-4), "mismatch vs reference (default tile)"

    # Same batch with a smaller explicit tile: 5 grid steps, ragged last block.
    out3 = jax.block_until_ready(fnn_forward(x2, *params, tile_rows=1024))
    assert out3.shape == (B2, OUTPUT_SIZE)
    assert jnp.allclose(out3, ref2, atol=1e-4, rtol=1e-4), "mismatch vs reference (small tile)"

    print("KERNEL_OK")
</pallas_src>

<mosaic_0001>
module attributes {stable_mosaic.version = 11 : i64} {
  func.func @fnn_kernel(%arg0: i32, %arg1: memref<8x36xf32, #tpu.memory_space<vmem>>, %arg2: memref<36x18xf32, #tpu.memory_space<vmem>>, %arg3: memref<1x18xf32, #tpu.memory_space<vmem>>, %arg4: memref<18x18xf32, #tpu.memory_space<vmem>>, %arg5: memref<1x18xf32, #tpu.memory_space<vmem>>, %arg6: memref<18x1xf32, #tpu.memory_space<vmem>>, %arg7: memref<3xf32, #tpu.memory_space<smem>>, %arg8: memref<8x1xf32, #tpu.memory_space<vmem>>) attributes {dimension_semantics = [#tpu.dimension_semantics<parallel>], iteration_bounds = array<i64: 1>, scalar_prefetch = 0 : i64, scratch_operands = 0 : i64, tpu.core_type = #tpu.core_type<tc>, window_params = [{transform_indices = @transform_0, window_bounds = array<i64: 8, 36>}, {pipeline_mode = #tpu.pipeline_mode<synchronous>, transform_indices = @transform_1, window_bounds = array<i64: 36, 18>}, {pipeline_mode = #tpu.pipeline_mode<synchronous>, transform_indices = @transform_2, window_bounds = array<i64: 1, 18>}, {pipeline_mode = #tpu.pipeline_mode<synchronous>, transform_indices = @transform_3, window_bounds = array<i64: 18, 18>}, {pipeline_mode = #tpu.pipeline_mode<synchronous>, transform_indices = @transform_4, window_bounds = array<i64: 1, 18>}, {pipeline_mode = #tpu.pipeline_mode<synchronous>, transform_indices = @transform_5, window_bounds = array<i64: 18, 1>}, {transform_indices = @transform_6, window_bounds = array<i64: 3>}, {transform_indices = @transform_7, window_bounds = array<i64: 8, 1>}]} {
    %c0 = arith.constant 0 : index
    %c0_0 = arith.constant 0 : index
    %0 = vector.load %arg1[%c0, %c0_0] : memref<8x36xf32, #tpu.memory_space<vmem>>, vector<8x36xf32>
    %c0_1 = arith.constant 0 : index
    %1 = memref.load %arg7[%c0_1] : memref<3xf32, #tpu.memory_space<smem>>
    %c1 = arith.constant 1 : index
    %2 = memref.load %arg7[%c1] : memref<3xf32, #tpu.memory_space<smem>>
    %c2 = arith.constant 2 : index
    %3 = memref.load %arg7[%c2] : memref<3xf32, #tpu.memory_space<smem>>
    %c0_2 = arith.constant 0 : index
    %c0_3 = arith.constant 0 : index
    %4 = vector.load %arg2[%c0_2, %c0_3] : memref<36x18xf32, #tpu.memory_space<vmem>>, vector<36x18xf32>
    %cst = arith.constant dense<0.000000e+00> : vector<8x18xf32>
    %5 = tpu.matmul %0, %4, %cst {dimension_numbers = #tpu.dot_dimension_numbers<[1], [0], [0], [1], [0, 0, 1, 1], [], []>} : vector<8x36xf32>, vector<36x18xf32>, vector<8x18xf32> -> vector<8x18xf32>
    %c0_4 = arith.constant 0 : index
    %c0_5 = arith.constant 0 : index
    %6 = vector.load %arg3[%c0_4, %c0_5] : memref<1x18xf32, #tpu.memory_space<vmem>>, vector<1x18xf32>
    %7 = vector.broadcast %6 : vector<1x18xf32> to vector<8x18xf32>
    %8 = arith.addf %5, %7 : vector<8x18xf32>
    %cst_6 = arith.constant 0.000000e+00 : f32
    %9 = vector.broadcast %cst_6 : f32 to vector<8x18xf32>
    %10 = arith.cmpf oge, %8, %9 : vector<8x18xf32>
    %11 = vector.broadcast %1 : f32 to vector<8x18xf32>
    %12 = arith.mulf %11, %8 : vector<8x18xf32>
    %13 = arith.select %10, %8, %12 : vector<8x18xi1>, vector<8x18xf32>
    %c0_7 = arith.constant 0 : index
    %c0_8 = arith.constant 0 : index
    %14 = vector.load %arg4[%c0_7, %c0_8] : memref<18x18xf32, #tpu.memory_space<vmem>>, vector<18x18xf32>
    %cst_9 = arith.constant dense<0.000000e+00> : vector<8x18xf32>
    %15 = tpu.matmul %13, %14, %cst_9 {dimension_numbers = #tpu.dot_dimension_numbers<[1], [0], [0], [1], [0, 0, 1, 1], [], []>} : vector<8x18xf32>, vector<18x18xf32>, vector<8x18xf32> -> vector<8x18xf32>
    %c0_10 = arith.constant 0 : index
    %c0_11 = arith.constant 0 : index
    %16 = vector.load %arg5[%c0_10, %c0_11] : memref<1x18xf32, #tpu.memory_space<vmem>>, vector<1x18xf32>
    %17 = vector.broadcast %16 : vector<1x18xf32> to vector<8x18xf32>
    %18 = arith.addf %15, %17 : vector<8x18xf32>
    %cst_12 = arith.constant 0.000000e+00 : f32
    %19 = vector.broadcast %cst_12 : f32 to vector<8x18xf32>
    %20 = arith.cmpf oge, %18, %19 : vector<8x18xf32>
    %21 = vector.broadcast %2 : f32 to vector<8x18xf32>
    %22 = arith.mulf %21, %18 : vector<8x18xf32>
    %23 = arith.select %20, %18, %22 : vector<8x18xi1>, vector<8x18xf32>
    %c0_13 = arith.constant 0 : index
    %c0_14 = arith.constant 0 : index
    %24 = vector.load %arg6[%c0_13, %c0_14] : memref<18x1xf32, #tpu.memory_space<vmem>>, vector<18x1xf32>
    %cst_15 = arith.constant dense<0.000000e+00> : vector<8x1xf32>
    %25 = tpu.matmul %23, %24, %cst_15 {dimension_numbers = #tpu.dot_dimension_numbers<[1], [0], [0], [1], [0, 0, 1, 1], [], []>} : vector<8x18xf32>, vector<18x1xf32>, vector<8x1xf32> -> vector<8x1xf32>
    %26 = vector.broadcast %3 : f32 to vector<8x1xf32>
    %27 = arith.addf %25, %26 : vector<8x1xf32>
    %c0_16 = arith.constant 0 : index
    %c0_17 = arith.constant 0 : index
    %28 = vector.load %arg8[%c0_16, %c0_17] : memref<8x1xf32, #tpu.memory_space<vmem>>, vector<8x1xf32>
    tpu.vector_store %arg8[%c0_16, %c0_17], %27 {strides = array<i32>} : memref<8x1xf32, #tpu.memory_space<vmem>>, vector<8x1xf32>,
    return
  }
  func.func @transform_0(%arg0: i32) -> (i32, i32) {
    %c0_i32 = arith.constant 0 : i32
    %c0_i32_0 = arith.constant 0 : i32
    return %arg0, %c0_i32 : i32, i32
  }
  func.func @transform_1(%arg0: i32) -> (i32, i32) {
    %c0_i32 = arith.constant 0 : i32
    %c0_i32_0 = arith.constant 0 : i32
    %c0_i32_1 = arith.constant 0 : i32
    return %c0_i32, %c0_i32_0 : i32, i32
  }
  func.func @transform_2(%arg0: i32) -> (i32, i32) {
    %c0_i32 = arith.constant 0 : i32
    %c0_i32_0 = arith.constant 0 : i32
    %c0_i32_1 = arith.constant 0 : i32
    return %c0_i32, %c0_i32_0 : i32, i32
  }
  func.func @transform_3(%arg0: i32) -> (i32, i32) {
    %c0_i32 = arith.constant 0 : i32
    %c0_i32_0 = arith.constant 0 : i32
    %c0_i32_1 = arith.constant 0 : i32
    return %c0_i32, %c0_i32_0 : i32, i32
  }
  func.func @transform_4(%arg0: i32) -> (i32, i32) {
    %c0_i32 = arith.constant 0 : i32
    %c0_i32_0 = arith.constant 0 : i32
    %c0_i32_1 = arith.constant 0 : i32
    return %c0_i32, %c0_i32_0 : i32, i32
  }
  func.func @transform_5(%arg0: i32) -> (i32, i32) {
    %c0_i32 = arith.constant 0 : i32
    %c0_i32_0 = arith.constant 0 : i32
    %c0_i32_1 = arith.constant 0 : i32
    return %c0_i32, %c0_i32_0 : i32, i32
  }
  func.func @transform_6(%arg0: i32) -> i32 {
    %c0_i32 = arith.constant 0 : i32
    %c0_i32_0 = arith.constant 0 : i32
    return %c0_i32 : i32
  }
  func.func @transform_7(%arg0: i32) -> (i32, i32) {
    %c0_i32 = arith.constant 0 : i32
    %c0_i32_0 = arith.constant 0 : i32
    return %arg0, %c0_i32 : i32, i32
  }
}

</mosaic_0001>

<bundles_post_ra>
// kernel: tpu_custom_call.1
= control target key start
LH: loop header
LB: loop body
LE: loop exit
PB: predicated region body
PF: predicated region fallthrough
CT: control target
= control target key end

     0   :  { %12 = vsyncpa [#allocation3], 0  ;;  %s500_s0 = inlined_call_operand.vmem [shape: f32[8,36], index: 0, kind: input, shape index: {}]   ;;  %s501_s1 = inlined_call_operand.vmem [shape: f32[36,18], index: 1, kind: input, shape index: {}]   ;;  %s502_s2 = inlined_call_operand.vmem [shape: f32[1,18], index: 2, kind: input, shape index: {}]   ;;  %s503_s3 = inlined_call_operand.vmem [shape: f32[18,18], index: 3, kind: input, shape index: {}]   ;;  %s504_s4 = inlined_call_operand.vmem [shape: f32[1,18], index: 4, kind: input, shape index: {}]   ;;  %s505_s5 = inlined_call_operand.vmem [shape: f32[18,1], index: 5, kind: input, shape index: {}]   ;;  %s506_s6 = inlined_call_operand.vmem [shape: f32[3], index: 6, kind: input, shape index: {}]   ;;  %s507_s7 = inlined_call_operand.vmem [shape: f32[8,1], index: 7, kind: output, shape index: {}]  }
   0x1   :  { %s31_s26 = sshll.u32 %s506_s6, 4  ;;  %s32_s26 = int_to_ptr.vmem [resolvable:$true] %s31_s26 }
   0x2   :  { %s387_s27 = scalar_lea.vmem %s32_s26, 16  ;;  %p392_p1 = scmp.lt.s32.totalorder %s32_s26, %s32_s26 }
   0x3   :  { %p388_p0 = scmp.ne.s32.totalorder %s32_s26, %s387_s27  ;;  %p393_p2 = scmp.lt.s32.totalorder %s387_s27, %s387_s27 }
   0x5   :  { %p394_p3 = por %p393_p2, %p392_p1 }
   0x7   :  { %p395_p4 = pnand %p394_p3, %p388_p0 }
   0x9   :  { %398 = shalt.err (!%p395_p4)
}
   0xa   :  { %s401_s28 = smov [#allocation2]  }
   0xb   :  { %34 = dma.vmem_to_smem %s32_s26, 16, %s401_s28, [#allocation3]  }
   0xc   :  { %399 = dma.done.wait [#allocation3], 16  }
   0xd   :  { %400 = vsyncadd [#allocation3], 4294967280 }
   0xe   :  { %38 = sfence }
   0xf   :  { %v43_v0 = vld [vmem:[%s501_s1] sm:$0xff]  ;;  %v44_v1 = vld [vmem:[%s501_s1 + $0x8] sm:$0xff]  ;;  %v45_v2 = vld [vmem:[%s501_s1 + $0x10] sm:$0xff]  ;;  %v402_v3 = vmov 0.0|0.0   ;;  %vm403_vm0 = vmmov 0   ;;  %v404_v6 = vmov 0.0  }
  0x10   :  { %371 = vmatprep.subr.bf16.mxu0 %v402_v3  ;;  %v372_v4 = vpack.c.bf16 %v44_v1, %v43_v0  ;;  %v46_v5 = vld [vmem:[%s501_s1 + $0x18] sm:$0xff]  ;;  %377 = vmatprep.subr.bf16.mxu1 %v402_v3  ;;  %v47_v8 = vld [vmem:[%s501_s1 + $0x20] sm:$0xf]  ;;  %vm59_vm1 = vcmask 1043456   ;;  %vm55_vm2 = vcmask 293888   ;;  %v138_v11 = vld [vmem:[%s503_s3 + $0x8] sm:$0xff] }
  0x11   :  { %350 = vmatprep.mubr.msk.f32.mxu0 %vm403_vm0, %v404_v6  ;;  %359 = vmatprep.mubr.msk.f32.mxu1 %vm403_vm0, %v404_v6  ;;  %v375_v7 = vpack.c.bf16 %v46_v5, %v45_v2  ;;  %v39_v9 = vld [vmem:[%s500_s0] sm:$0xff]  ;;  %v139_v13 = vld [vmem:[%s503_s3 + $0x10] sm:$0x3]  ;;  %vm151_vm3 = vcmask 1041408   ;;  %s40_s0 = sld [smem:[#allocation2]]  ;;  %vm147_vm5 = vcmask 146432  }
  0x12   :  { %373 = vmatpush3.bf16.msra.mxu0 %v372_v4  ;;  %v137_v10 = vld [vmem:[%s503_s3] sm:$0xff]  ;;  %v230_v22 = vld [vmem:[%s505_s5 + $0x8] sm:$0xff]  ;;  %v231_v24 = vld [vmem:[%s505_s5 + $0x10] sm:$0x3]  ;;  %s316_s28 = sld [smem:[#allocation2 + $0x1]]  ;;  %s317_s8 = sld [smem:[#allocation2 + $0x2]] }
  0x13   :  { %374 = vmatprep.subr.bf16.mxu0 %v402_v3  ;;  %v378_v12 = vpack.c.bf16 %v138_v11, %v137_v10  ;;  %v318_v14 = vld [vmem:[%s502_s2] ss:$0 sm:$0xff]  ;;  %vm309_vm7 = vcmask 7168  }
  0x14   :  { %v229_v21 = vld [vmem:[%s505_s5] sm:$0xff] }
  0x15   :  { %379 = vmatpush3.bf16.msra.mxu1 %v378_v12  ;;  %v381_v23 = vpack.c.bf16 %v230_v22, %v229_v21  ;;  %v321_v25 = vld [vmem:[%s504_s4] ss:$0 sm:$0xff] }
  0x16   :  { %376 = vmatpush3.bf16.msra.mxu0 %v375_v7  ;;  %357 = vmatprep.subr.mxu1 %v404_v6 }
  0x17   :  { %348 = vmatprep.subr.mxu0 %v404_v6  ;;  %v134_v16 = vstv %s40_s0 }
  0x18   :  { %v226_v27 = vstv %s316_s28  ;;  %v232_v32 = vstv %s317_s8 }
  0x19   :  { %358 = vmatpush3.msk.msra.mxu1 %vm151_vm3, %v139_v13 }
  0x1a   :  { %349 = vmatpush3.msk.msra.mxu0 %vm59_vm1, %v47_v8  ;;  %380 = vmatprep.subr.bf16.mxu1 %v402_v3 }
  0x1b   :  { %351 = vmatmul.mubr.msk.f32.vlgmr.msra.gmra.mrb[0].mxu0 %vm55_vm2, %v39_v9 }
  0xee   :  { %v129_v15 = vpop.f32.mrb[0].mxu0 }
  0xef   :  { %v130_v17 = vadd.f32 %v318_v14, %v129_v15  ;;  %v352_v18 = vpop.f32.mrb[1].mxu0 }
  0xf1   :  { %vm133_vm4 = vcmp.ge.f32.partialorder %v130_v17, 0.0  ;;  %v135_v19 = vmul.f32 %v134_v16, %v130_v17 }
  0xf3   :  { %v136_v20 = vsel %vm133_vm4, %v130_v17, %v135_v19 }
  0xf4   :  { %360 = vmatmul.mubr.msk.f32.vlgmr.msra.gmra.mrb[0].mxu1 %vm147_vm5, %v136_v20 }
  0xf5   :  { %368 = vmatprep.mubr.msk.f32.mxu1 %vm403_vm0, %v404_v6  ;;  %382 = vmatpush3.bf16.msra.mxu1 %v381_v23 }
  0xf6   :  { %366 = vmatprep.subr.mxu1 %v404_v6 }
  0xf9   :  { %367 = vmatpush3.msk.msra.mxu1 %vm151_vm3, %v231_v24 }
 0x1c7   :  { %v221_v26 = vpop.f32.mrb[0].mxu1 }
 0x1c8   :  { %v222_v28 = vadd.f32 %v321_v25, %v221_v26  ;;  %v361_v29 = vpop.f32.mrb[1].mxu1 }
 0x1ca   :  { %vm225_vm6 = vcmp.ge.f32.partialorder %v222_v28, 0.0  ;;  %v227_v30 = vmul.f32 %v226_v27, %v222_v28 }
 0x1cc   :  { %v228_v31 = vsel %vm225_vm6, %v222_v28, %v227_v30 }
 0x1cd   :  { %369 = vmatmul.mubr.msk.f32.vlgmr.msra.gmra.mrb[2].mxu1 %vm147_vm5, %v228_v31 }
 0x2a0   :  { %v305_v33 = vpop.f32.mrb[2].mxu1 }
 0x2a1   :  { %v306_v34 = vadd.f32 %v305_v33, %v232_v32  ;;  %v370_v35 = vpop.f32.mrb[3].mxu1 }
 0x2a3   :  { %310 = vst.msk [vmem:[%s507_s7] sm:$0xff] %vm309_vm7, %v306_v34 }
 0x2a4   :  { %315 = vsyncpa [#allocation3], 1 }

</bundles_post_ra>
